<compile_context>
chip_gen: v7x
topology: tpu7x:2x2x1
jax: 0.10.0
libtpu: 0.0.40
codegen_flags: <defaults>
</compile_context>

<pallas_src>
import functools
import math

import jax
import jax.numpy as jnp
from jax.experimental import pallas as pl
from jax.experimental.pallas import tpu as pltpu

BN_EPS = 1e-5


def _round_up(n, m):
    return ((n + m - 1) // m) * m


def _pick_lane_block(n):
    """Largest lane-dense block (multiple of 128) that divides n, else n."""
    for c in (2048, 1024, 512, 256, 128):
        if n >= c and n % c == 0:
            return c
    return n


def make_offsets(field_dims):
    offs = [0]
    for d in field_dims[:-1]:
        offs.append(offs[-1] + d)
    return jnp.asarray(offs, dtype=jnp.int32)


# --------------------------------------------------------------------------
# Kernel A: per-batch-tile DeepFM core.
#   outputs: rowterm = linear + interaction   (Bp, 1) f32
#            deep    = MLP output             (Bp, 1) f32
# --------------------------------------------------------------------------
def deepfm_core_kernel(idx_ref, feat_ref, fcb_ref, emb_mask_ref, *rest,
                       tile_b, num_fields, slot_width, num_hidden,
                       resident_table):
    n_mlp = 2 * num_hidden + 2
    mlp_refs = rest[:n_mlp]
    rowterm_ref = rest[n_mlp]
    deep_ref = rest[n_mlp + 1]

    f32 = jnp.float32
    TB, F, S = tile_b, num_fields, slot_width

    if resident_table:
        # feat_ref is the full fused (V, S) table, resident in VMEM.
        # Gather TB*F rows into the gbuf scratch with dynamic VMEM reads
        # (scalar index from SMEM -> (1, S) row load -> packed store).
        gbuf = rest[n_mlp + 2]
        i = pl.program_id(0)
        rows_per_iter = 8                       # TB is always a multiple of 8

        def gather_group(g, carry):
            for rr in range(rows_per_iter):     # static unroll (8 rows)
                r = g * rows_per_iter + rr
                base = (i * TB + r) * F
                for f in range(F):              # F is small & static
                    row = idx_ref[base + f]
                    gbuf[pl.ds(r, 1), f * S:(f + 1) * S] = (
                        feat_ref[pl.ds(row, 1), :])
            return carry

        jax.lax.fori_loop(0, TB // rows_per_iter, gather_group, 0)
        src = gbuf
    else:
        # feat_ref is a pre-gathered (TB, F*S) block (XLA gather in wrapper).
        src = feat_ref

    # ---- FM: first-order + second-order terms (f32), per-field slices
    #      read straight from VMEM (no full padded-tile materialization) ----
    sum_r = jnp.zeros((TB, S), f32)
    sum_sq = jnp.zeros((TB, S), f32)
    for f in range(F):
        ef = src[:, f * S:(f + 1) * S].astype(f32)   # (TB, S) = (emb | fc)
        sum_r = sum_r + ef
        sum_sq = sum_sq + ef * ef
    emb_mask = emb_mask_ref[...]                     # (1, S): 1 emb, 0 fc lane
    inter = 0.5 * jnp.sum((sum_r * sum_r - sum_sq) * emb_mask,
                          axis=1, keepdims=True)
    lin = jnp.sum(sum_r * (1.0 - emb_mask), axis=1, keepdims=True)
    rowterm_ref[...] = lin + fcb_ref[...] + inter

    # ---- Deep MLP: bf16 MXU matmuls, f32 accumulation (BN folded in W/b) ----
    h = src[...].astype(jnp.bfloat16)                # (TB, F*S), K = F*(D+1)
    for l in range(num_hidden):
        w = mlp_refs[2 * l][...]                     # bf16 (K, H)
        b = mlp_refs[2 * l + 1][...]                 # f32  (1, H)
        h = jnp.dot(h, w, preferred_element_type=f32) + b
        h = jnp.maximum(h, 0.0).astype(jnp.bfloat16)
    w_out = mlp_refs[2 * num_hidden][...]            # f32 (1, H_last)
    b_out = mlp_refs[2 * num_hidden + 1][...]        # f32 (1, 1)
    deep_ref[...] = jnp.sum(h.astype(f32) * w_out, axis=1, keepdims=True) + b_out


# --------------------------------------------------------------------------
# Kernel B: broadcast-combine, out[i, j] = sigmoid(rowterm[i] + deep[j]).
# Tiled on both axes so VMEM stays bounded for any batch.
# --------------------------------------------------------------------------
def combine_kernel(rowterm_ref, deeprow_ref, out_ref):
    logits = rowterm_ref[...] + deeprow_ref[...]      # (TB,1)+(1,TJ)->(TB,TJ)
    out_ref[...] = 1.0 / (1.0 + jnp.exp(-logits))     # exact sigmoid (EUP exp)


# --------------------------------------------------------------------------
# Parameter preparation: fuse fc into the table (packed, no lane padding),
# fold eval-mode BN scale, cast MLP weights to bf16.
# --------------------------------------------------------------------------
def prepare_deepfm(params, field_dims, embed_dim, batch_norm=True):
    F = len(field_dims)
    D = embed_dim
    V = sum(field_dims)
    S = D + 1                                     # per-field slot: emb | fc
    scale = (1.0 / math.sqrt(1.0 + BN_EPS)) if batch_norm else 1.0

    table = jnp.concatenate([params["emb"].astype(jnp.float32),
                             params["fc"].astype(jnp.float32)], axis=1)

    emb_mask = jnp.ones((1, S), jnp.float32).at[0, D].set(0.0)

    hidden = params["mlp"][:-1]
    w_out, b_out = params["mlp"][-1]
    assert len(hidden) >= 1, "DeepFM MLP needs at least one hidden layer"

    mlp_args = []
    for l, (w, b) in enumerate(hidden):
        w = w * scale                             # fold eval-mode BN scale
        b = b * scale
        if l == 0:
            H0 = w.shape[1]
            # First-layer weight laid out per field slot (zero row at the
            # fused fc lane) -> K = F*(D+1), only F extra rows of padding.
            w = (jnp.zeros((F, S, H0), jnp.float32)
                 .at[:, :D, :].set(w.reshape(F, D, H0))
                 .reshape(F * S, H0))
        mlp_args.append(w.astype(jnp.bfloat16))
        mlp_args.append(b.astype(jnp.float32))
    mlp_args.append(w_out.reshape(1, -1).astype(jnp.float32))   # (1, H_last)
    mlp_args.append(b_out.astype(jnp.float32))                  # (1, 1)

    return dict(table=table, emb_mask=emb_mask,
                fc_bias=params["fc_bias"].astype(jnp.float32),
                mlp_args=tuple(mlp_args), num_hidden=len(hidden),
                F=F, D=D, S=S, V=V, offsets=make_offsets(field_dims))


# --------------------------------------------------------------------------
# Forward.
# --------------------------------------------------------------------------
def deepfm_forward(x, prep, tile_b=None):
    B = x.shape[0]
    F, S = prep["F"], prep["S"]
    num_hidden = prep["num_hidden"]
    mlp_args = prep["mlp_args"]
    table = prep["table"]

    # ---- batch tiling (amortize per-step overhead, >=2 steps for megacore) --
    if tile_b is None:
        TB = min(256, _round_up(max(B, 1), 8))
        if B >= 16 and _round_up(B, TB) // TB < 2:
            TB = max(8, _round_up((B + 1) // 2, 8))
    else:
        TB = tile_b
    assert TB % 8 == 0
    Bp = _round_up(B, TB)

    idx = x.astype(jnp.int32) + prep["offsets"][None, :]
    if Bp != B:
        idx = jnp.concatenate([idx, jnp.zeros((Bp - B, F), jnp.int32)], axis=0)
    idx_flat = idx.reshape(Bp * F)

    # ---- per-generation VMEM budget: resident table when it fits ----------
    try:
        vmem_cap = int(pltpu.get_tpu_info().vmem_capacity_bytes)
    except Exception:                  # conservative (v7x-sized) default
        vmem_cap = 64 << 20
    table_bytes = int(table.size) * table.dtype.itemsize
    weight_bytes = sum(int(a.size) * a.dtype.itemsize for a in mlp_args)
    table_budget = vmem_cap // 2 - (8 << 20)          # ~24 MiB on v7x
    resident = table_bytes <= max(4 << 20, table_budget)

    gbuf_bytes = TB * F * S * 4
    vmem_need = (table_bytes + 2 * weight_bytes + gbuf_bytes
                 + 4 * TB * max(F * S, 512) * 4 + (4 << 20))
    vmem_limit = int(min(max(vmem_need, 32 << 20), vmem_cap - (16 << 20)))

    kern = functools.partial(
        deepfm_core_kernel, tile_b=TB, num_fields=F, slot_width=S,
        num_hidden=num_hidden, resident_table=resident)

    inv = lambda i, idx_ref: (0, 0)         # grid-invariant (stays resident)
    row_map = lambda i, idx_ref: (i, 0)

    if resident:
        feat_input = table                                   # (V, S) in VMEM
        feat_spec = pl.BlockSpec(table.shape, inv)
        scratch = [pltpu.VMEM((TB, F * S), jnp.float32)]
    else:
        # TODO(synk): large-vocab path — gather once in XLA; an in-kernel
        # double-buffered HBM DMA gather would avoid this round-trip.
        feats = jnp.take(table, idx.reshape(-1), axis=0).reshape(Bp, F * S)
        feat_input = feats
        feat_spec = pl.BlockSpec((TB, F * S), row_map)
        scratch = []

    grid_spec = pltpu.PrefetchScalarGridSpec(
        num_scalar_prefetch=1,
        grid=(Bp // TB,),
        in_specs=[feat_spec,
                  pl.BlockSpec((1, 1), inv),                 # fc bias
                  pl.BlockSpec((1, S), inv)]                 # emb/fc lane mask
                 + [pl.BlockSpec(a.shape, inv) for a in mlp_args],
        out_specs=[pl.BlockSpec((TB, 1), row_map),
                   pl.BlockSpec((TB, 1), row_map)],
        scratch_shapes=scratch,
    )
    rowterm, deep = pl.pallas_call(
        kern,
        grid_spec=grid_spec,
        out_shape=(jax.ShapeDtypeStruct((Bp, 1), jnp.float32),
                   jax.ShapeDtypeStruct((Bp, 1), jnp.float32)),
        compiler_params=pltpu.CompilerParams(
            dimension_semantics=("parallel",),
            vmem_limit_bytes=vmem_limit),
    )(idx_flat, feat_input, prep["fc_bias"], prep["emb_mask"], *mlp_args)

    # ---- (B, B) broadcast combine (faithful to the torch (B,1)+(B,) shape),
    #      2-D tiled so the output block stays bounded. ----------------------
    deep_row = deep.reshape(1, Bp)                   # lane-dense layout
    TJ = _pick_lane_block(Bp)
    out = pl.pallas_call(
        combine_kernel,
        out_shape=jax.ShapeDtypeStruct((Bp, Bp), jnp.float32),
        grid=(Bp // TB, Bp // TJ),
        in_specs=[pl.BlockSpec((TB, 1), lambda i, j: (i, 0)),
                  pl.BlockSpec((1, TJ), lambda i, j: (0, j))],
        out_specs=pl.BlockSpec((TB, TJ), lambda i, j: (i, j)),
        compiler_params=pltpu.CompilerParams(
            dimension_semantics=("parallel", "parallel")),
    )(rowterm, deep_row)

    return out[:B, :B]


# --------------------------------------------------------------------------
# Parameter init matching the PyTorch module, and a pure-JAX f32 reference.
# --------------------------------------------------------------------------
def init_params(key, field_dims, embed_dim, mlp_dims):
    V = sum(field_dims)
    F = len(field_dims)
    keys = jax.random.split(key, 2 + len(mlp_dims) + 1)

    eb = math.sqrt(6.0 / (V + embed_dim))                 # xavier_uniform
    emb = jax.random.uniform(keys[0], (V, embed_dim), jnp.float32, -eb, eb)
    fc = jax.random.normal(keys[1], (V, 1), dtype=jnp.float32)
    fc_bias = jnp.zeros((1, 1), jnp.float32)

    mlp = []
    in_dim = F * embed_dim
    for i, out_dim in enumerate(list(mlp_dims) + [1]):
        bnd = math.sqrt(6.0 / (in_dim + out_dim))
        w = jax.random.uniform(keys[2 + i], (in_dim, out_dim), jnp.float32,
                               -bnd, bnd)
        b = jnp.zeros((1, out_dim), jnp.float32)
        mlp.append((w, b))
        in_dim = out_dim
    return dict(emb=emb, fc=fc, fc_bias=fc_bias, mlp=mlp)


def deepfm_reference(x, params, field_dims, embed_dim, batch_norm=True):
    """Pure-JAX f32 reference replicating the PyTorch forward (eval mode)."""
    B = x.shape[0]
    F = len(field_dims)
    offsets = make_offsets(field_dims)
    idx = x.astype(jnp.int32) + offsets[None, :]
    embed = params["emb"][idx]                                  # (B, F, D)
    linear_term = jnp.sum(params["fc"][idx], axis=1) + params["fc_bias"][0]
    sos = jnp.sum(embed, axis=1) ** 2
    ss = jnp.sum(embed ** 2, axis=1)
    interaction = 0.5 * jnp.sum(sos - ss, axis=1, keepdims=True)

    scale = (1.0 / math.sqrt(1.0 + BN_EPS)) if batch_norm else 1.0
    h = embed.reshape(B, F * embed_dim)
    for (w, b) in params["mlp"][:-1]:
        h = jnp.maximum((h @ w + b[0]) * scale, 0.0)
    w_out, b_out = params["mlp"][-1]
    deep = (h @ w_out + b_out[0])[:, 0]                         # (B,)
    out = linear_term + interaction + deep                      # (B, B)
    return jax.nn.sigmoid(out)


if __name__ == "__main__":
    field_dims = (16, 24, 12, 12)     # vocab total V = 64, F = 4 fields
    embed_dim = 16
    mlp_dims = (32, 16)
    batch = 8

    key = jax.random.PRNGKey(0)
    pkey, xkey = jax.random.split(key)
    params = init_params(pkey, field_dims, embed_dim, mlp_dims)

    cols = []
    for f, fd in enumerate(field_dims):
        cols.append(jax.random.randint(jax.random.fold_in(xkey, f),
                                       (batch, 1), 0, fd, dtype=jnp.int32))
    x = jnp.concatenate(cols, axis=1)                           # (B, F) int32

    prep = prepare_deepfm(params, field_dims, embed_dim, batch_norm=True)
    out = jax.block_until_ready(deepfm_forward(x, prep))

    ref = deepfm_reference(x, params, field_dims, embed_dim, batch_norm=True)
    assert out.shape == (batch, batch)
    err = float(jnp.max(jnp.abs(out - ref)))
    # bf16 deep-path weights -> relaxed (but tighter than before) tolerance.
    assert err < 1e-2, f"mismatch: max abs err {err}"
    print("KERNEL_OK")
</pallas_src>

<mosaic_0001>
module attributes {stable_mosaic.version = 11 : i64} {
  func.func @deepfm_core_kernel(%arg0: i32, %arg1: memref<32xi32, #tpu.memory_space<smem>>, %arg2: memref<64x17xf32, #tpu.memory_space<vmem>>, %arg3: memref<1x1xf32, #tpu.memory_space<vmem>>, %arg4: memref<1x17xf32, #tpu.memory_space<vmem>>, %arg5: memref<68x32xbf16, #tpu.memory_space<vmem>>, %arg6: memref<1x32xf32, #tpu.memory_space<vmem>>, %arg7: memref<32x16xbf16, #tpu.memory_space<vmem>>, %arg8: memref<1x16xf32, #tpu.memory_space<vmem>>, %arg9: memref<1x16xf32, #tpu.memory_space<vmem>>, %arg10: memref<1x1xf32, #tpu.memory_space<vmem>>, %arg11: memref<8x1xf32, #tpu.memory_space<vmem>>, %arg12: memref<8x1xf32, #tpu.memory_space<vmem>>, %arg13: memref<8x68xf32, #tpu.memory_space<vmem>>) attributes {dimension_semantics = [#tpu.dimension_semantics<parallel>], iteration_bounds = array<i64: 1>, scalar_prefetch = 1 : i64, scratch_operands = 1 : i64, tpu.core_type = #tpu.core_type<tc>, window_params = [{pipeline_mode = #tpu.pipeline_mode<synchronous>, transform_indices = @transform_0, window_bounds = array<i64: 64, 17>}, {pipeline_mode = #tpu.pipeline_mode<synchronous>, transform_indices = @transform_1, window_bounds = array<i64: 1, 1>}, {pipeline_mode = #tpu.pipeline_mode<synchronous>, transform_indices = @transform_2, window_bounds = array<i64: 1, 17>}, {pipeline_mode = #tpu.pipeline_mode<synchronous>, transform_indices = @transform_3, window_bounds = array<i64: 68, 32>}, {pipeline_mode = #tpu.pipeline_mode<synchronous>, transform_indices = @transform_4, window_bounds = array<i64: 1, 32>}, {pipeline_mode = #tpu.pipeline_mode<synchronous>, transform_indices = @transform_5, window_bounds = array<i64: 32, 16>}, {pipeline_mode = #tpu.pipeline_mode<synchronous>, transform_indices = @transform_6, window_bounds = array<i64: 1, 16>}, {pipeline_mode = #tpu.pipeline_mode<synchronous>, transform_indices = @transform_7, window_bounds = array<i64: 1, 16>}, {pipeline_mode = #tpu.pipeline_mode<synchronous>, transform_indices = @transform_8, window_bounds = array<i64: 1, 1>}, {transform_indices = @transform_9, window_bounds = array<i64: 8, 1>}, {transform_indices = @transform_10, window_bounds = array<i64: 8, 1>}]} {
    %c0_i32 = arith.constant 0 : i32
    %c8_i32 = arith.constant 8 : i32
    %0 = arith.muli %c0_i32, %c8_i32 : i32
    %c0_i32_0 = arith.constant 0 : i32
    %1 = arith.addi %0, %c0_i32_0 : i32
    %c8_i32_1 = arith.constant 8 : i32
    %2 = arith.muli %arg0, %c8_i32_1 : i32
    %3 = arith.addi %2, %1 : i32
    %c4_i32 = arith.constant 4 : i32
    %4 = arith.muli %3, %c4_i32 : i32
    %c0_i32_2 = arith.constant 0 : i32
    %5 = arith.addi %4, %c0_i32_2 : i32
    %6 = arith.index_cast %5 : i32 to index
    %7 = memref.load %arg1[%6] : memref<32xi32, #tpu.memory_space<smem>>
    %8 = arith.index_cast %7 : i32 to index
    %c0 = arith.constant 0 : index
    %9 = vector.load %arg2[%8, %c0] : memref<64x17xf32, #tpu.memory_space<vmem>>, vector<1x17xf32>
    %10 = arith.index_cast %1 : i32 to index
    %c0_3 = arith.constant 0 : index
    %11 = vector.load %arg13[%10, %c0_3] : memref<8x68xf32, #tpu.memory_space<vmem>>, vector<1x17xf32>
    tpu.vector_store %arg13[%10, %c0_3], %9 {strides = array<i32>} : memref<8x68xf32, #tpu.memory_space<vmem>>, vector<1x17xf32>,
    %c1_i32 = arith.constant 1 : i32
    %12 = arith.addi %4, %c1_i32 : i32
    %13 = arith.index_cast %12 : i32 to index
    %14 = memref.load %arg1[%13] : memref<32xi32, #tpu.memory_space<smem>>
    %15 = arith.index_cast %14 : i32 to index
    %c0_4 = arith.constant 0 : index
    %16 = vector.load %arg2[%15, %c0_4] : memref<64x17xf32, #tpu.memory_space<vmem>>, vector<1x17xf32>
    %17 = arith.index_cast %1 : i32 to index
    %c17 = arith.constant 17 : index
    %18 = vector.load %arg13[%17, %c17] : memref<8x68xf32, #tpu.memory_space<vmem>>, vector<1x17xf32>
    tpu.vector_store %arg13[%17, %c17], %16 {strides = array<i32>} : memref<8x68xf32, #tpu.memory_space<vmem>>, vector<1x17xf32>,
    %c2_i32 = arith.constant 2 : i32
    %19 = arith.addi %4, %c2_i32 : i32
    %20 = arith.index_cast %19 : i32 to index
    %21 = memref.load %arg1[%20] : memref<32xi32, #tpu.memory_space<smem>>
    %22 = arith.index_cast %21 : i32 to index
    %c0_5 = arith.constant 0 : index
    %23 = vector.load %arg2[%22, %c0_5] : memref<64x17xf32, #tpu.memory_space<vmem>>, vector<1x17xf32>
    %24 = arith.index_cast %1 : i32 to index
    %c34 = arith.constant 34 : index
    %25 = vector.load %arg13[%24, %c34] : memref<8x68xf32, #tpu.memory_space<vmem>>, vector<1x17xf32>
    tpu.vector_store %arg13[%24, %c34], %23 {strides = array<i32>} : memref<8x68xf32, #tpu.memory_space<vmem>>, vector<1x17xf32>,
    %c3_i32 = arith.constant 3 : i32
    %26 = arith.addi %4, %c3_i32 : i32
    %27 = arith.index_cast %26 : i32 to index
    %28 = memref.load %arg1[%27] : memref<32xi32, #tpu.memory_space<smem>>
    %29 = arith.index_cast %28 : i32 to index
    %c0_6 = arith.constant 0 : index
    %30 = vector.load %arg2[%29, %c0_6] : memref<64x17xf32, #tpu.memory_space<vmem>>, vector<1x17xf32>
    %31 = arith.index_cast %1 : i32 to index
    %c51 = arith.constant 51 : index
    %32 = vector.load %arg13[%31, %c51] : memref<8x68xf32, #tpu.memory_space<vmem>>, vector<1x17xf32>
    tpu.vector_store %arg13[%31, %c51], %30 {strides = array<i32>} : memref<8x68xf32, #tpu.memory_space<vmem>>, vector<1x17xf32>,
    %c8_i32_7 = arith.constant 8 : i32
    %33 = arith.muli %c0_i32, %c8_i32_7 : i32
    %c1_i32_8 = arith.constant 1 : i32
    %34 = arith.addi %33, %c1_i32_8 : i32
    %c8_i32_9 = arith.constant 8 : i32
    %35 = arith.muli %arg0, %c8_i32_9 : i32
    %36 = arith.addi %35, %34 : i32
    %c4_i32_10 = arith.constant 4 : i32
    %37 = arith.muli %36, %c4_i32_10 : i32
    %c0_i32_11 = arith.constant 0 : i32
    %38 = arith.addi %37, %c0_i32_11 : i32
    %39 = arith.index_cast %38 : i32 to index
    %40 = memref.load %arg1[%39] : memref<32xi32, #tpu.memory_space<smem>>
    %41 = arith.index_cast %40 : i32 to index
    %c0_12 = arith.constant 0 : index
    %42 = vector.load %arg2[%41, %c0_12] : memref<64x17xf32, #tpu.memory_space<vmem>>, vector<1x17xf32>
    %43 = arith.index_cast %34 : i32 to index
    %c0_13 = arith.constant 0 : index
    %44 = vector.load %arg13[%43, %c0_13] : memref<8x68xf32, #tpu.memory_space<vmem>>, vector<1x17xf32>
    tpu.vector_store %arg13[%43, %c0_13], %42 {strides = array<i32>} : memref<8x68xf32, #tpu.memory_space<vmem>>, vector<1x17xf32>,
    %c1_i32_14 = arith.constant 1 : i32
    %45 = arith.addi %37, %c1_i32_14 : i32
    %46 = arith.index_cast %45 : i32 to index
    %47 = memref.load %arg1[%46] : memref<32xi32, #tpu.memory_space<smem>>
    %48 = arith.index_cast %47 : i32 to index
    %c0_15 = arith.constant 0 : index
    %49 = vector.load %arg2[%48, %c0_15] : memref<64x17xf32, #tpu.memory_space<vmem>>, vector<1x17xf32>
    %50 = arith.index_cast %34 : i32 to index
    %c17_16 = arith.constant 17 : index
    %51 = vector.load %arg13[%50, %c17_16] : memref<8x68xf32, #tpu.memory_space<vmem>>, vector<1x17xf32>
    tpu.vector_store %arg13[%50, %c17_16], %49 {strides = array<i32>} : memref<8x68xf32, #tpu.memory_space<vmem>>, vector<1x17xf32>,
    %c2_i32_17 = arith.constant 2 : i32
    %52 = arith.addi %37, %c2_i32_17 : i32
    %53 = arith.index_cast %52 : i32 to index
    %54 = memref.load %arg1[%53] : memref<32xi32, #tpu.memory_space<smem>>
    %55 = arith.index_cast %54 : i32 to index
    %c0_18 = arith.constant 0 : index
    %56 = vector.load %arg2[%55, %c0_18] : memref<64x17xf32, #tpu.memory_space<vmem>>, vector<1x17xf32>
    %57 = arith.index_cast %34 : i32 to index
    %c34_19 = arith.constant 34 : index
    %58 = vector.load %arg13[%57, %c34_19] : memref<8x68xf32, #tpu.memory_space<vmem>>, vector<1x17xf32>
    tpu.vector_store %arg13[%57, %c34_19], %56 {strides = array<i32>} : memref<8x68xf32, #tpu.memory_space<vmem>>, vector<1x17xf32>,
    %c3_i32_20 = arith.constant 3 : i32
    %59 = arith.addi %37, %c3_i32_20 : i32
    %60 = arith.index_cast %59 : i32 to index
    %61 = memref.load %arg1[%60] : memref<32xi32, #tpu.memory_space<smem>>
    %62 = arith.index_cast %61 : i32 to index
    %c0_21 = arith.constant 0 : index
    %63 = vector.load %arg2[%62, %c0_21] : memref<64x17xf32, #tpu.memory_space<vmem>>, vector<1x17xf32>
    %64 = arith.index_cast %34 : i32 to index
    %c51_22 = arith.constant 51 : index
    %65 = vector.load %arg13[%64, %c51_22] : memref<8x68xf32, #tpu.memory_space<vmem>>, vector<1x17xf32>
    tpu.vector_store %arg13[%64, %c51_22], %63 {strides = array<i32>} : memref<8x68xf32, #tpu.memory_space<vmem>>, vector<1x17xf32>,
    %c8_i32_23 = arith.constant 8 : i32
    %66 = arith.muli %c0_i32, %c8_i32_23 : i32
    %c2_i32_24 = arith.constant 2 : i32
    %67 = arith.addi %66, %c2_i32_24 : i32
    %c8_i32_25 = arith.constant 8 : i32
    %68 = arith.muli %arg0, %c8_i32_25 : i32
    %69 = arith.addi %68, %67 : i32
    %c4_i32_26 = arith.constant 4 : i32
    %70 = arith.muli %69, %c4_i32_26 : i32
    %c0_i32_27 = arith.constant 0 : i32
    %71 = arith.addi %70, %c0_i32_27 : i32
    %72 = arith.index_cast %71 : i32 to index
    %73 = memref.load %arg1[%72] : memref<32xi32, #tpu.memory_space<smem>>
    %74 = arith.index_cast %73 : i32 to index
    %c0_28 = arith.constant 0 : index
    %75 = vector.load %arg2[%74, %c0_28] : memref<64x17xf32, #tpu.memory_space<vmem>>, vector<1x17xf32>
    %76 = arith.index_cast %67 : i32 to index
    %c0_29 = arith.constant 0 : index
    %77 = vector.load %arg13[%76, %c0_29] : memref<8x68xf32, #tpu.memory_space<vmem>>, vector<1x17xf32>
    tpu.vector_store %arg13[%76, %c0_29], %75 {strides = array<i32>} : memref<8x68xf32, #tpu.memory_space<vmem>>, vector<1x17xf32>,
    %c1_i32_30 = arith.constant 1 : i32
    %78 = arith.addi %70, %c1_i32_30 : i32
    %79 = arith.index_cast %78 : i32 to index
    %80 = memref.load %arg1[%79] : memref<32xi32, #tpu.memory_space<smem>>
    %81 = arith.index_cast %80 : i32 to index
    %c0_31 = arith.constant 0 : index
    %82 = vector.load %arg2[%81, %c0_31] : memref<64x17xf32, #tpu.memory_space<vmem>>, vector<1x17xf32>
    %83 = arith.index_cast %67 : i32 to index
    %c17_32 = arith.constant 17 : index
    %84 = vector.load %arg13[%83, %c17_32] : memref<8x68xf32, #tpu.memory_space<vmem>>, vector<1x17xf32>
    tpu.vector_store %arg13[%83, %c17_32], %82 {strides = array<i32>} : memref<8x68xf32, #tpu.memory_space<vmem>>, vector<1x17xf32>,
    %c2_i32_33 = arith.constant 2 : i32
    %85 = arith.addi %70, %c2_i32_33 : i32
    %86 = arith.index_cast %85 : i32 to index
    %87 = memref.load %arg1[%86] : memref<32xi32, #tpu.memory_space<smem>>
    %88 = arith.index_cast %87 : i32 to index
    %c0_34 = arith.constant 0 : index
    %89 = vector.load %arg2[%88, %c0_34] : memref<64x17xf32, #tpu.memory_space<vmem>>, vector<1x17xf32>
    %90 = arith.index_cast %67 : i32 to index
    %c34_35 = arith.constant 34 : index
    %91 = vector.load %arg13[%90, %c34_35] : memref<8x68xf32, #tpu.memory_space<vmem>>, vector<1x17xf32>
    tpu.vector_store %arg13[%90, %c34_35], %89 {strides = array<i32>} : memref<8x68xf32, #tpu.memory_space<vmem>>, vector<1x17xf32>,
    %c3_i32_36 = arith.constant 3 : i32
    %92 = arith.addi %70, %c3_i32_36 : i32
    %93 = arith.index_cast %92 : i32 to index
    %94 = memref.load %arg1[%93] : memref<32xi32, #tpu.memory_space<smem>>
    %95 = arith.index_cast %94 : i32 to index
    %c0_37 = arith.constant 0 : index
    %96 = vector.load %arg2[%95, %c0_37] : memref<64x17xf32, #tpu.memory_space<vmem>>, vector<1x17xf32>
    %97 = arith.index_cast %67 : i32 to index
    %c51_38 = arith.constant 51 : index
    %98 = vector.load %arg13[%97, %c51_38] : memref<8x68xf32, #tpu.memory_space<vmem>>, vector<1x17xf32>
    tpu.vector_store %arg13[%97, %c51_38], %96 {strides = array<i32>} : memref<8x68xf32, #tpu.memory_space<vmem>>, vector<1x17xf32>,
    %c8_i32_39 = arith.constant 8 : i32
    %99 = arith.muli %c0_i32, %c8_i32_39 : i32
    %c3_i32_40 = arith.constant 3 : i32
    %100 = arith.addi %99, %c3_i32_40 : i32
    %c8_i32_41 = arith.constant 8 : i32
    %101 = arith.muli %arg0, %c8_i32_41 : i32
    %102 = arith.addi %101, %100 : i32
    %c4_i32_42 = arith.constant 4 : i32
    %103 = arith.muli %102, %c4_i32_42 : i32
    %c0_i32_43 = arith.constant 0 : i32
    %104 = arith.addi %103, %c0_i32_43 : i32
    %105 = arith.index_cast %104 : i32 to index
    %106 = memref.load %arg1[%105] : memref<32xi32, #tpu.memory_space<smem>>
    %107 = arith.index_cast %106 : i32 to index
    %c0_44 = arith.constant 0 : index
    %108 = vector.load %arg2[%107, %c0_44] : memref<64x17xf32, #tpu.memory_space<vmem>>, vector<1x17xf32>
    %109 = arith.index_cast %100 : i32 to index
    %c0_45 = arith.constant 0 : index
    %110 = vector.load %arg13[%109, %c0_45] : memref<8x68xf32, #tpu.memory_space<vmem>>, vector<1x17xf32>
    tpu.vector_store %arg13[%109, %c0_45], %108 {strides = array<i32>} : memref<8x68xf32, #tpu.memory_space<vmem>>, vector<1x17xf32>,
    %c1_i32_46 = arith.constant 1 : i32
    %111 = arith.addi %103, %c1_i32_46 : i32
    %112 = arith.index_cast %111 : i32 to index
    %113 = memref.load %arg1[%112] : memref<32xi32, #tpu.memory_space<smem>>
    %114 = arith.index_cast %113 : i32 to index
    %c0_47 = arith.constant 0 : index
    %115 = vector.load %arg2[%114, %c0_47] : memref<64x17xf32, #tpu.memory_space<vmem>>, vector<1x17xf32>
    %116 = arith.index_cast %100 : i32 to index
    %c17_48 = arith.constant 17 : index
    %117 = vector.load %arg13[%116, %c17_48] : memref<8x68xf32, #tpu.memory_space<vmem>>, vector<1x17xf32>
    tpu.vector_store %arg13[%116, %c17_48], %115 {strides = array<i32>} : memref<8x68xf32, #tpu.memory_space<vmem>>, vector<1x17xf32>,
    %c2_i32_49 = arith.constant 2 : i32
    %118 = arith.addi %103, %c2_i32_49 : i32
    %119 = arith.index_cast %118 : i32 to index
    %120 = memref.load %arg1[%119] : memref<32xi32, #tpu.memory_space<smem>>
    %121 = arith.index_cast %120 : i32 to index
    %c0_50 = arith.constant 0 : index
    %122 = vector.load %arg2[%121, %c0_50] : memref<64x17xf32, #tpu.memory_space<vmem>>, vector<1x17xf32>
    %123 = arith.index_cast %100 : i32 to index
    %c34_51 = arith.constant 34 : index
    %124 = vector.load %arg13[%123, %c34_51] : memref<8x68xf32, #tpu.memory_space<vmem>>, vector<1x17xf32>
    tpu.vector_store %arg13[%123, %c34_51], %122 {strides = array<i32>} : memref<8x68xf32, #tpu.memory_space<vmem>>, vector<1x17xf32>,
    %c3_i32_52 = arith.constant 3 : i32
    %125 = arith.addi %103, %c3_i32_52 : i32
    %126 = arith.index_cast %125 : i32 to index
    %127 = memref.load %arg1[%126] : memref<32xi32, #tpu.memory_space<smem>>
    %128 = arith.index_cast %127 : i32 to index
    %c0_53 = arith.constant 0 : index
    %129 = vector.load %arg2[%128, %c0_53] : memref<64x17xf32, #tpu.memory_space<vmem>>, vector<1x17xf32>
    %130 = arith.index_cast %100 : i32 to index
    %c51_54 = arith.constant 51 : index
    %131 = vector.load %arg13[%130, %c51_54] : memref<8x68xf32, #tpu.memory_space<vmem>>, vector<1x17xf32>
    tpu.vector_store %arg13[%130, %c51_54], %129 {strides = array<i32>} : memref<8x68xf32, #tpu.memory_space<vmem>>, vector<1x17xf32>,
    %c8_i32_55 = arith.constant 8 : i32
    %132 = arith.muli %c0_i32, %c8_i32_55 : i32
    %c4_i32_56 = arith.constant 4 : i32
    %133 = arith.addi %132, %c4_i32_56 : i32
    %c8_i32_57 = arith.constant 8 : i32
    %134 = arith.muli %arg0, %c8_i32_57 : i32
    %135 = arith.addi %134, %133 : i32
    %c4_i32_58 = arith.constant 4 : i32
    %136 = arith.muli %135, %c4_i32_58 : i32
    %c0_i32_59 = arith.constant 0 : i32
    %137 = arith.addi %136, %c0_i32_59 : i32
    %138 = arith.index_cast %137 : i32 to index
    %139 = memref.load %arg1[%138] : memref<32xi32, #tpu.memory_space<smem>>
    %140 = arith.index_cast %139 : i32 to index
    %c0_60 = arith.constant 0 : index
    %141 = vector.load %arg2[%140, %c0_60] : memref<64x17xf32, #tpu.memory_space<vmem>>, vector<1x17xf32>
    %142 = arith.index_cast %133 : i32 to index
    %c0_61 = arith.constant 0 : index
    %143 = vector.load %arg13[%142, %c0_61] : memref<8x68xf32, #tpu.memory_space<vmem>>, vector<1x17xf32>
    tpu.vector_store %arg13[%142, %c0_61], %141 {strides = array<i32>} : memref<8x68xf32, #tpu.memory_space<vmem>>, vector<1x17xf32>,
    %c1_i32_62 = arith.constant 1 : i32
    %144 = arith.addi %136, %c1_i32_62 : i32
    %145 = arith.index_cast %144 : i32 to index
    %146 = memref.load %arg1[%145] : memref<32xi32, #tpu.memory_space<smem>>
    %147 = arith.index_cast %146 : i32 to index
    %c0_63 = arith.constant 0 : index
    %148 = vector.load %arg2[%147, %c0_63] : memref<64x17xf32, #tpu.memory_space<vmem>>, vector<1x17xf32>
    %149 = arith.index_cast %133 : i32 to index
    %c17_64 = arith.constant 17 : index
    %150 = vector.load %arg13[%149, %c17_64] : memref<8x68xf32, #tpu.memory_space<vmem>>, vector<1x17xf32>
    tpu.vector_store %arg13[%149, %c17_64], %148 {strides = array<i32>} : memref<8x68xf32, #tpu.memory_space<vmem>>, vector<1x17xf32>,
    %c2_i32_65 = arith.constant 2 : i32
    %151 = arith.addi %136, %c2_i32_65 : i32
    %152 = arith.index_cast %151 : i32 to index
    %153 = memref.load %arg1[%152] : memref<32xi32, #tpu.memory_space<smem>>
    %154 = arith.index_cast %153 : i32 to index
    %c0_66 = arith.constant 0 : index
    %155 = vector.load %arg2[%154, %c0_66] : memref<64x17xf32, #tpu.memory_space<vmem>>, vector<1x17xf32>
    %156 = arith.index_cast %133 : i32 to index
    %c34_67 = arith.constant 34 : index
    %157 = vector.load %arg13[%156, %c34_67] : memref<8x68xf32, #tpu.memory_space<vmem>>, vector<1x17xf32>
    tpu.vector_store %arg13[%156, %c34_67], %155 {strides = array<i32>} : memref<8x68xf32, #tpu.memory_space<vmem>>, vector<1x17xf32>,
    %c3_i32_68 = arith.constant 3 : i32
    %158 = arith.addi %136, %c3_i32_68 : i32
    %159 = arith.index_cast %158 : i32 to index
    %160 = memref.load %arg1[%159] : memref<32xi32, #tpu.memory_space<smem>>
    %161 = arith.index_cast %160 : i32 to index
    %c0_69 = arith.constant 0 : index
    %162 = vector.load %arg2[%161, %c0_69] : memref<64x17xf32, #tpu.memory_space<vmem>>, vector<1x17xf32>
    %163 = arith.index_cast %133 : i32 to index
    %c51_70 = arith.constant 51 : index
    %164 = vector.load %arg13[%163, %c51_70] : memref<8x68xf32, #tpu.memory_space<vmem>>, vector<1x17xf32>
    tpu.vector_store %arg13[%163, %c51_70], %162 {strides = array<i32>} : memref<8x68xf32, #tpu.memory_space<vmem>>, vector<1x17xf32>,
    %c8_i32_71 = arith.constant 8 : i32
    %165 = arith.muli %c0_i32, %c8_i32_71 : i32
    %c5_i32 = arith.constant 5 : i32
    %166 = arith.addi %165, %c5_i32 : i32
    %c8_i32_72 = arith.constant 8 : i32
    %167 = arith.muli %arg0, %c8_i32_72 : i32
    %168 = arith.addi %167, %166 : i32
    %c4_i32_73 = arith.constant 4 : i32
    %169 = arith.muli %168, %c4_i32_73 : i32
    %c0_i32_74 = arith.constant 0 : i32
    %170 = arith.addi %169, %c0_i32_74 : i32
    %171 = arith.index_cast %170 : i32 to index
    %172 = memref.load %arg1[%171] : memref<32xi32, #tpu.memory_space<smem>>
    %173 = arith.index_cast %172 : i32 to index
    %c0_75 = arith.constant 0 : index
    %174 = vector.load %arg2[%173, %c0_75] : memref<64x17xf32, #tpu.memory_space<vmem>>, vector<1x17xf32>
    %175 = arith.index_cast %166 : i32 to index
    %c0_76 = arith.constant 0 : index
    %176 = vector.load %arg13[%175, %c0_76] : memref<8x68xf32, #tpu.memory_space<vmem>>, vector<1x17xf32>
    tpu.vector_store %arg13[%175, %c0_76], %174 {strides = array<i32>} : memref<8x68xf32, #tpu.memory_space<vmem>>, vector<1x17xf32>,
    %c1_i32_77 = arith.constant 1 : i32
    %177 = arith.addi %169, %c1_i32_77 : i32
    %178 = arith.index_cast %177 : i32 to index
    %179 = memref.load %arg1[%178] : memref<32xi32, #tpu.memory_space<smem>>
    %180 = arith.index_cast %179 : i32 to index
    %c0_78 = arith.constant 0 : index
    %181 = vector.load %arg2[%180, %c0_78] : memref<64x17xf32, #tpu.memory_space<vmem>>, vector<1x17xf32>
    %182 = arith.index_cast %166 : i32 to index
    %c17_79 = arith.constant 17 : index
    %183 = vector.load %arg13[%182, %c17_79] : memref<8x68xf32, #tpu.memory_space<vmem>>, vector<1x17xf32>
    tpu.vector_store %arg13[%182, %c17_79], %181 {strides = array<i32>} : memref<8x68xf32, #tpu.memory_space<vmem>>, vector<1x17xf32>,
    %c2_i32_80 = arith.constant 2 : i32
    %184 = arith.addi %169, %c2_i32_80 : i32
    %185 = arith.index_cast %184 : i32 to index
    %186 = memref.load %arg1[%185] : memref<32xi32, #tpu.memory_space<smem>>
    %187 = arith.index_cast %186 : i32 to index
    %c0_81 = arith.constant 0 : index
    %188 = vector.load %arg2[%187, %c0_81] : memref<64x17xf32, #tpu.memory_space<vmem>>, vector<1x17xf32>
    %189 = arith.index_cast %166 : i32 to index
    %c34_82 = arith.constant 34 : index
    %190 = vector.load %arg13[%189, %c34_82] : memref<8x68xf32, #tpu.memory_space<vmem>>, vector<1x17xf32>
    tpu.vector_store %arg13[%189, %c34_82], %188 {strides = array<i32>} : memref<8x68xf32, #tpu.memory_space<vmem>>, vector<1x17xf32>,
    %c3_i32_83 = arith.constant 3 : i32
    %191 = arith.addi %169, %c3_i32_83 : i32
    %192 = arith.index_cast %191 : i32 to index
    %193 = memref.load %arg1[%192] : memref<32xi32, #tpu.memory_space<smem>>
    %194 = arith.index_cast %193 : i32 to index
    %c0_84 = arith.constant 0 : index
    %195 = vector.load %arg2[%194, %c0_84] : memref<64x17xf32, #tpu.memory_space<vmem>>, vector<1x17xf32>
    %196 = arith.index_cast %166 : i32 to index
    %c51_85 = arith.constant 51 : index
    %197 = vector.load %arg13[%196, %c51_85] : memref<8x68xf32, #tpu.memory_space<vmem>>, vector<1x17xf32>
    tpu.vector_store %arg13[%196, %c51_85], %195 {strides = array<i32>} : memref<8x68xf32, #tpu.memory_space<vmem>>, vector<1x17xf32>,
    %c8_i32_86 = arith.constant 8 : i32
    %198 = arith.muli %c0_i32, %c8_i32_86 : i32
    %c6_i32 = arith.constant 6 : i32
    %199 = arith.addi %198, %c6_i32 : i32
    %c8_i32_87 = arith.constant 8 : i32
    %200 = arith.muli %arg0, %c8_i32_87 : i32
    %201 = arith.addi %200, %199 : i32
    %c4_i32_88 = arith.constant 4 : i32
    %202 = arith.muli %201, %c4_i32_88 : i32
    %c0_i32_89 = arith.constant 0 : i32
    %203 = arith.addi %202, %c0_i32_89 : i32
    %204 = arith.index_cast %203 : i32 to index
    %205 = memref.load %arg1[%204] : memref<32xi32, #tpu.memory_space<smem>>
    %206 = arith.index_cast %205 : i32 to index
    %c0_90 = arith.constant 0 : index
    %207 = vector.load %arg2[%206, %c0_90] : memref<64x17xf32, #tpu.memory_space<vmem>>, vector<1x17xf32>
    %208 = arith.index_cast %199 : i32 to index
    %c0_91 = arith.constant 0 : index
    %209 = vector.load %arg13[%208, %c0_91] : memref<8x68xf32, #tpu.memory_space<vmem>>, vector<1x17xf32>
    tpu.vector_store %arg13[%208, %c0_91], %207 {strides = array<i32>} : memref<8x68xf32, #tpu.memory_space<vmem>>, vector<1x17xf32>,
    %c1_i32_92 = arith.constant 1 : i32
    %210 = arith.addi %202, %c1_i32_92 : i32
    %211 = arith.index_cast %210 : i32 to index
    %212 = memref.load %arg1[%211] : memref<32xi32, #tpu.memory_space<smem>>
    %213 = arith.index_cast %212 : i32 to index
    %c0_93 = arith.constant 0 : index
    %214 = vector.load %arg2[%213, %c0_93] : memref<64x17xf32, #tpu.memory_space<vmem>>, vector<1x17xf32>
    %215 = arith.index_cast %199 : i32 to index
    %c17_94 = arith.constant 17 : index
    %216 = vector.load %arg13[%215, %c17_94] : memref<8x68xf32, #tpu.memory_space<vmem>>, vector<1x17xf32>
    tpu.vector_store %arg13[%215, %c17_94], %214 {strides = array<i32>} : memref<8x68xf32, #tpu.memory_space<vmem>>, vector<1x17xf32>,
    %c2_i32_95 = arith.constant 2 : i32
    %217 = arith.addi %202, %c2_i32_95 : i32
    %218 = arith.index_cast %217 : i32 to index
    %219 = memref.load %arg1[%218] : memref<32xi32, #tpu.memory_space<smem>>
    %220 = arith.index_cast %219 : i32 to index
    %c0_96 = arith.constant 0 : index
    %221 = vector.load %arg2[%220, %c0_96] : memref<64x17xf32, #tpu.memory_space<vmem>>, vector<1x17xf32>
    %222 = arith.index_cast %199 : i32 to index
    %c34_97 = arith.constant 34 : index
    %223 = vector.load %arg13[%222, %c34_97] : memref<8x68xf32, #tpu.memory_space<vmem>>, vector<1x17xf32>
    tpu.vector_store %arg13[%222, %c34_97], %221 {strides = array<i32>} : memref<8x68xf32, #tpu.memory_space<vmem>>, vector<1x17xf32>,
    %c3_i32_98 = arith.constant 3 : i32
    %224 = arith.addi %202, %c3_i32_98 : i32
    %225 = arith.index_cast %224 : i32 to index
    %226 = memref.load %arg1[%225] : memref<32xi32, #tpu.memory_space<smem>>
    %227 = arith.index_cast %226 : i32 to index
    %c0_99 = arith.constant 0 : index
    %228 = vector.load %arg2[%227, %c0_99] : memref<64x17xf32, #tpu.memory_space<vmem>>, vector<1x17xf32>
    %229 = arith.index_cast %199 : i32 to index
    %c51_100 = arith.constant 51 : index
    %230 = vector.load %arg13[%229, %c51_100] : memref<8x68xf32, #tpu.memory_space<vmem>>, vector<1x17xf32>
    tpu.vector_store %arg13[%229, %c51_100], %228 {strides = array<i32>} : memref<8x68xf32, #tpu.memory_space<vmem>>, vector<1x17xf32>,
    %c8_i32_101 = arith.constant 8 : i32
    %231 = arith.muli %c0_i32, %c8_i32_101 : i32
    %c7_i32 = arith.constant 7 : i32
    %232 = arith.addi %231, %c7_i32 : i32
    %c8_i32_102 = arith.constant 8 : i32
    %233 = arith.muli %arg0, %c8_i32_102 : i32
    %234 = arith.addi %233, %232 : i32
    %c4_i32_103 = arith.constant 4 : i32
    %235 = arith.muli %234, %c4_i32_103 : i32
    %c0_i32_104 = arith.constant 0 : i32
    %236 = arith.addi %235, %c0_i32_104 : i32
    %237 = arith.index_cast %236 : i32 to index
    %238 = memref.load %arg1[%237] : memref<32xi32, #tpu.memory_space<smem>>
    %239 = arith.index_cast %238 : i32 to index
    %c0_105 = arith.constant 0 : index
    %240 = vector.load %arg2[%239, %c0_105] : memref<64x17xf32, #tpu.memory_space<vmem>>, vector<1x17xf32>
    %241 = arith.index_cast %232 : i32 to index
    %c0_106 = arith.constant 0 : index
    %242 = vector.load %arg13[%241, %c0_106] : memref<8x68xf32, #tpu.memory_space<vmem>>, vector<1x17xf32>
    tpu.vector_store %arg13[%241, %c0_106], %240 {strides = array<i32>} : memref<8x68xf32, #tpu.memory_space<vmem>>, vector<1x17xf32>,
    %c1_i32_107 = arith.constant 1 : i32
    %243 = arith.addi %235, %c1_i32_107 : i32
    %244 = arith.index_cast %243 : i32 to index
    %245 = memref.load %arg1[%244] : memref<32xi32, #tpu.memory_space<smem>>
    %246 = arith.index_cast %245 : i32 to index
    %c0_108 = arith.constant 0 : index
    %247 = vector.load %arg2[%246, %c0_108] : memref<64x17xf32, #tpu.memory_space<vmem>>, vector<1x17xf32>
    %248 = arith.index_cast %232 : i32 to index
    %c17_109 = arith.constant 17 : index
    %249 = vector.load %arg13[%248, %c17_109] : memref<8x68xf32, #tpu.memory_space<vmem>>, vector<1x17xf32>
    tpu.vector_store %arg13[%248, %c17_109], %247 {strides = array<i32>} : memref<8x68xf32, #tpu.memory_space<vmem>>, vector<1x17xf32>,
    %c2_i32_110 = arith.constant 2 : i32
    %250 = arith.addi %235, %c2_i32_110 : i32
    %251 = arith.index_cast %250 : i32 to index
    %252 = memref.load %arg1[%251] : memref<32xi32, #tpu.memory_space<smem>>
    %253 = arith.index_cast %252 : i32 to index
    %c0_111 = arith.constant 0 : index
    %254 = vector.load %arg2[%253, %c0_111] : memref<64x17xf32, #tpu.memory_space<vmem>>, vector<1x17xf32>
    %255 = arith.index_cast %232 : i32 to index
    %c34_112 = arith.constant 34 : index
    %256 = vector.load %arg13[%255, %c34_112] : memref<8x68xf32, #tpu.memory_space<vmem>>, vector<1x17xf32>
    tpu.vector_store %arg13[%255, %c34_112], %254 {strides = array<i32>} : memref<8x68xf32, #tpu.memory_space<vmem>>, vector<1x17xf32>,
    %c3_i32_113 = arith.constant 3 : i32
    %257 = arith.addi %235, %c3_i32_113 : i32
    %258 = arith.index_cast %257 : i32 to index
    %259 = memref.load %arg1[%258] : memref<32xi32, #tpu.memory_space<smem>>
    %260 = arith.index_cast %259 : i32 to index
    %c0_114 = arith.constant 0 : index
    %261 = vector.load %arg2[%260, %c0_114] : memref<64x17xf32, #tpu.memory_space<vmem>>, vector<1x17xf32>
    %262 = arith.index_cast %232 : i32 to index
    %c51_115 = arith.constant 51 : index
    %263 = vector.load %arg13[%262, %c51_115] : memref<8x68xf32, #tpu.memory_space<vmem>>, vector<1x17xf32>
    tpu.vector_store %arg13[%262, %c51_115], %261 {strides = array<i32>} : memref<8x68xf32, #tpu.memory_space<vmem>>, vector<1x17xf32>,
    %c1_i32_116 = arith.constant 1 : i32
    %cst = arith.constant 0.000000e+00 : f32
    %264 = vector.broadcast %cst : f32 to vector<8x17xf32>
    %cst_117 = arith.constant 0.000000e+00 : f32
    %265 = vector.broadcast %cst_117 : f32 to vector<8x17xf32>
    %c0_118 = arith.constant 0 : index
    %c0_119 = arith.constant 0 : index
    %266 = vector.load %arg13[%c0_118, %c0_119] : memref<8x68xf32, #tpu.memory_space<vmem>>, vector<8x17xf32>
    %267 = arith.addf %264, %266 : vector<8x17xf32>
    %268 = arith.mulf %266, %266 : vector<8x17xf32>
    %269 = arith.addf %265, %268 : vector<8x17xf32>
    %c0_120 = arith.constant 0 : index
    %c17_121 = arith.constant 17 : index
    %270 = vector.load %arg13[%c0_120, %c17_121] : memref<8x68xf32, #tpu.memory_space<vmem>>, vector<8x17xf32>
    %271 = arith.addf %267, %270 : vector<8x17xf32>
    %272 = arith.mulf %270, %270 : vector<8x17xf32>
    %273 = arith.addf %269, %272 : vector<8x17xf32>
    %c0_122 = arith.constant 0 : index
    %c34_123 = arith.constant 34 : index
    %274 = vector.load %arg13[%c0_122, %c34_123] : memref<8x68xf32, #tpu.memory_space<vmem>>, vector<8x17xf32>
    %275 = arith.addf %271, %274 : vector<8x17xf32>
    %276 = arith.mulf %274, %274 : vector<8x17xf32>
    %277 = arith.addf %273, %276 : vector<8x17xf32>
    %c0_124 = arith.constant 0 : index
    %c51_125 = arith.constant 51 : index
    %278 = vector.load %arg13[%c0_124, %c51_125] : memref<8x68xf32, #tpu.memory_space<vmem>>, vector<8x17xf32>
    %279 = arith.addf %275, %278 : vector<8x17xf32>
    %280 = arith.mulf %278, %278 : vector<8x17xf32>
    %281 = arith.addf %277, %280 : vector<8x17xf32>
    %c0_126 = arith.constant 0 : index
    %c0_127 = arith.constant 0 : index
    %282 = vector.load %arg4[%c0_126, %c0_127] : memref<1x17xf32, #tpu.memory_space<vmem>>, vector<1x17xf32>
    %283 = arith.mulf %279, %279 : vector<8x17xf32>
    %284 = arith.subf %283, %281 : vector<8x17xf32>
    %285 = vector.broadcast %282 : vector<1x17xf32> to vector<8x17xf32>
    %286 = arith.mulf %284, %285 : vector<8x17xf32>
    %cst_128 = arith.constant dense<0.000000e+00> : vector<8xf32>
    %287 = vector.multi_reduction <add>, %286, %cst_128 [1] : vector<8x17xf32> to vector<8xf32>
    %288 = vector.shape_cast %287 : vector<8xf32> to vector<8x1xf32>
    %cst_129 = arith.constant 5.000000e-01 : f32
    %289 = vector.broadcast %cst_129 : f32 to vector<8x1xf32>
    %290 = arith.mulf %289, %288 : vector<8x1xf32>
    %cst_130 = arith.constant 1.000000e+00 : f32
    %291 = vector.broadcast %cst_130 : f32 to vector<1x17xf32>
    %292 = arith.subf %291, %282 : vector<1x17xf32>
    %293 = vector.broadcast %292 : vector<1x17xf32> to vector<8x17xf32>
    %294 = arith.mulf %279, %293 : vector<8x17xf32>
    %cst_131 = arith.constant dense<0.000000e+00> : vector<8xf32>
    %295 = vector.multi_reduction <add>, %294, %cst_131 [1] : vector<8x17xf32> to vector<8xf32>
    %296 = vector.shape_cast %295 : vector<8xf32> to vector<8x1xf32>
    %c0_132 = arith.constant 0 : index
    %c0_133 = arith.constant 0 : index
    %297 = vector.load %arg3[%c0_132, %c0_133] : memref<1x1xf32, #tpu.memory_space<vmem>>, vector<1x1xf32>
    %298 = vector.broadcast %297 : vector<1x1xf32> to vector<8x1xf32>
    %299 = arith.addf %296, %298 : vector<8x1xf32>
    %300 = arith.addf %299, %290 : vector<8x1xf32>
    %c0_134 = arith.constant 0 : index
    %c0_135 = arith.constant 0 : index
    %301 = vector.load %arg11[%c0_134, %c0_135] : memref<8x1xf32, #tpu.memory_space<vmem>>, vector<8x1xf32>
    tpu.vector_store %arg11[%c0_134, %c0_135], %300 {strides = array<i32>} : memref<8x1xf32, #tpu.memory_space<vmem>>, vector<8x1xf32>,
    %c0_136 = arith.constant 0 : index
    %c0_137 = arith.constant 0 : index
    %302 = vector.load %arg13[%c0_136, %c0_137] : memref<8x68xf32, #tpu.memory_space<vmem>>, vector<8x68xf32>
    %303 = arith.truncf %302 : vector<8x68xf32> to vector<8x68xbf16>
    %c0_138 = arith.constant 0 : index
    %c0_139 = arith.constant 0 : index
    %304 = vector.load %arg5[%c0_138, %c0_139] : memref<68x32xbf16, #tpu.memory_space<vmem>>, vector<68x32xbf16>
    %c0_140 = arith.constant 0 : index
    %c0_141 = arith.constant 0 : index
    %305 = vector.load %arg6[%c0_140, %c0_141] : memref<1x32xf32, #tpu.memory_space<vmem>>, vector<1x32xf32>
    %cst_142 = arith.constant dense<0.000000e+00> : vector<8x32xf32>
    %306 = tpu.matmul %303, %304, %cst_142 {dimension_numbers = #tpu.dot_dimension_numbers<[1], [0], [0], [1], [0, 0, 1, 1], [], []>} : vector<8x68xbf16>, vector<68x32xbf16>, vector<8x32xf32> -> vector<8x32xf32>
    %307 = vector.broadcast %305 : vector<1x32xf32> to vector<8x32xf32>
    %308 = arith.addf %306, %307 : vector<8x32xf32>
    %cst_143 = arith.constant 0.000000e+00 : f32
    %309 = vector.broadcast %cst_143 : f32 to vector<8x32xf32>
    %310 = arith.maximumf %308, %309 : vector<8x32xf32>
    %311 = arith.truncf %310 : vector<8x32xf32> to vector<8x32xbf16>
    %c0_144 = arith.constant 0 : index
    %c0_145 = arith.constant 0 : index
    %312 = vector.load %arg7[%c0_144, %c0_145] : memref<32x16xbf16, #tpu.memory_space<vmem>>, vector<32x16xbf16>
    %c0_146 = arith.constant 0 : index
    %c0_147 = arith.constant 0 : index
    %313 = vector.load %arg8[%c0_146, %c0_147] : memref<1x16xf32, #tpu.memory_space<vmem>>, vector<1x16xf32>
    %cst_148 = arith.constant dense<0.000000e+00> : vector<8x16xf32>
    %314 = tpu.matmul %311, %312, %cst_148 {dimension_numbers = #tpu.dot_dimension_numbers<[1], [0], [0], [1], [0, 0, 1, 1], [], []>} : vector<8x32xbf16>, vector<32x16xbf16>, vector<8x16xf32> -> vector<8x16xf32>
    %315 = vector.broadcast %313 : vector<1x16xf32> to vector<8x16xf32>
    %316 = arith.addf %314, %315 : vector<8x16xf32>
    %cst_149 = arith.constant 0.000000e+00 : f32
    %317 = vector.broadcast %cst_149 : f32 to vector<8x16xf32>
    %318 = arith.maximumf %316, %317 : vector<8x16xf32>
    %319 = arith.truncf %318 : vector<8x16xf32> to vector<8x16xbf16>
    %c0_150 = arith.constant 0 : index
    %c0_151 = arith.constant 0 : index
    %320 = vector.load %arg9[%c0_150, %c0_151] : memref<1x16xf32, #tpu.memory_space<vmem>>, vector<1x16xf32>
    %c0_152 = arith.constant 0 : index
    %c0_153 = arith.constant 0 : index
    %321 = vector.load %arg10[%c0_152, %c0_153] : memref<1x1xf32, #tpu.memory_space<vmem>>, vector<1x1xf32>
    %322 = arith.extf %319 : vector<8x16xbf16> to vector<8x16xf32>
    %323 = vector.broadcast %320 : vector<1x16xf32> to vector<8x16xf32>
    %324 = arith.mulf %322, %323 : vector<8x16xf32>
    %cst_154 = arith.constant dense<0.000000e+00> : vector<8xf32>
    %325 = vector.multi_reduction <add>, %324, %cst_154 [1] : vector<8x16xf32> to vector<8xf32>
    %326 = vector.shape_cast %325 : vector<8xf32> to vector<8x1xf32>
    %327 = vector.broadcast %321 : vector<1x1xf32> to vector<8x1xf32>
    %328 = arith.addf %326, %327 : vector<8x1xf32>
    %c0_155 = arith.constant 0 : index
    %c0_156 = arith.constant 0 : index
    %329 = vector.load %arg12[%c0_155, %c0_156] : memref<8x1xf32, #tpu.memory_space<vmem>>, vector<8x1xf32>
    tpu.vector_store %arg12[%c0_155, %c0_156], %328 {strides = array<i32>} : memref<8x1xf32, #tpu.memory_space<vmem>>, vector<8x1xf32>,
    return
  }
  func.func @transform_0(%arg0: i32, %arg1: memref<32xi32, #tpu.memory_space<smem>>) -> (i32, i32) {
    %c0_i32 = arith.constant 0 : i32
    %c0_i32_0 = arith.constant 0 : i32
    %c0_i32_1 = arith.constant 0 : i32
    return %c0_i32, %c0_i32_0 : i32, i32
  }
  func.func @transform_1(%arg0: i32, %arg1: memref<32xi32, #tpu.memory_space<smem>>) -> (i32, i32) {
    %c0_i32 = arith.constant 0 : i32
    %c0_i32_0 = arith.constant 0 : i32
    %c0_i32_1 = arith.constant 0 : i32
    return %c0_i32, %c0_i32_0 : i32, i32
  }
  func.func @transform_2(%arg0: i32, %arg1: memref<32xi32, #tpu.memory_space<smem>>) -> (i32, i32) {
    %c0_i32 = arith.constant 0 : i32
    %c0_i32_0 = arith.constant 0 : i32
    %c0_i32_1 = arith.constant 0 : i32
    return %c0_i32, %c0_i32_0 : i32, i32
  }
  func.func @transform_3(%arg0: i32, %arg1: memref<32xi32, #tpu.memory_space<smem>>) -> (i32, i32) {
    %c0_i32 = arith.constant 0 : i32
    %c0_i32_0 = arith.constant 0 : i32
    %c0_i32_1 = arith.constant 0 : i32
    return %c0_i32, %c0_i32_0 : i32, i32
  }
  func.func @transform_4(%arg0: i32, %arg1: memref<32xi32, #tpu.memory_space<smem>>) -> (i32, i32) {
    %c0_i32 = arith.constant 0 : i32
    %c0_i32_0 = arith.constant 0 : i32
    %c0_i32_1 = arith.constant 0 : i32
    return %c0_i32, %c0_i32_0 : i32, i32
  }
  func.func @transform_5(%arg0: i32, %arg1: memref<32xi32, #tpu.memory_space<smem>>) -> (i32, i32) {
    %c0_i32 = arith.constant 0 : i32
    %c0_i32_0 = arith.constant 0 : i32
    %c0_i32_1 = arith.constant 0 : i32
    return %c0_i32, %c0_i32_0 : i32, i32
  }
  func.func @transform_6(%arg0: i32, %arg1: memref<32xi32, #tpu.memory_space<smem>>) -> (i32, i32) {
    %c0_i32 = arith.constant 0 : i32
    %c0_i32_0 = arith.constant 0 : i32
    %c0_i32_1 = arith.constant 0 : i32
    return %c0_i32, %c0_i32_0 : i32, i32
  }
  func.func @transform_7(%arg0: i32, %arg1: memref<32xi32, #tpu.memory_space<smem>>) -> (i32, i32) {
    %c0_i32 = arith.constant 0 : i32
    %c0_i32_0 = arith.constant 0 : i32
    %c0_i32_1 = arith.constant 0 : i32
    return %c0_i32, %c0_i32_0 : i32, i32
  }
  func.func @transform_8(%arg0: i32, %arg1: memref<32xi32, #tpu.memory_space<smem>>) -> (i32, i32) {
    %c0_i32 = arith.constant 0 : i32
    %c0_i32_0 = arith.constant 0 : i32
    %c0_i32_1 = arith.constant 0 : i32
    return %c0_i32, %c0_i32_0 : i32, i32
  }
  func.func @transform_9(%arg0: i32, %arg1: memref<32xi32, #tpu.memory_space<smem>>) -> (i32, i32) {
    %c0_i32 = arith.constant 0 : i32
    %c0_i32_0 = arith.constant 0 : i32
    return %arg0, %c0_i32 : i32, i32
  }
  func.func @transform_10(%arg0: i32, %arg1: memref<32xi32, #tpu.memory_space<smem>>) -> (i32, i32) {
    %c0_i32 = arith.constant 0 : i32
    %c0_i32_0 = arith.constant 0 : i32
    return %arg0, %c0_i32 : i32, i32
  }
}

</mosaic_0001>

<bundles_post_ra>
// kernel: tpu_custom_call.1
= control target key start
LH: loop header
LB: loop body
LE: loop exit
PB: predicated region body
PF: predicated region fallthrough
CT: control target
= control target key end

     0   :  { %s1042_s0 = inlined_call_operand.vmem [shape: s32[32], index: 0, kind: input, shape index: {}]   ;;  %s1043_s1 = inlined_call_operand.vmem [shape: f32[64,17], index: 1, kind: input, shape index: {}]   ;;  %s1044_s3 = inlined_call_operand.vmem [shape: f32[1,17], index: 3, kind: input, shape index: {}]   ;;  %s1045_s4 = inlined_call_operand.vmem [shape: bf16[68,32], index: 4, kind: input, shape index: {}]   ;;  %s1046_s5 = inlined_call_operand.vmem [shape: f32[1,32], index: 5, kind: input, shape index: {}]   ;;  %s1047_s6 = inlined_call_operand.vmem [shape: bf16[32,16], index: 6, kind: input, shape index: {}]   ;;  %s1048_s7 = inlined_call_operand.vmem [shape: f32[1,16], index: 7, kind: input, shape index: {}]   ;;  %s1049_s8 = inlined_call_operand.vmem [shape: f32[1,16], index: 8, kind: input, shape index: {}]   ;;  %s1050_s10 = inlined_call_operand.vmem [shape: f32[8,1], index: 10, kind: output, shape index: {0}]   ;;  %s1051_s11 = inlined_call_operand.vmem [shape: f32[8,1], index: 11, kind: output, shape index: {1}]   ;;  %s1052_s2 = inlined_call_operand.<no memory space> [shape: f32[1,1], index: 2, kind: input, shape index: {}]   ;;  %s1053_s9 = inlined_call_operand.<no memory space> [shape: f32[1,1], index: 9, kind: input, shape index: {}]  }
   0x1   :  { %1056 = sst [smem:[#allocation8_spill]] %s1044_s3  ;;  %s17_s19 = sshll.u32 %s1042_s0, 4  ;;  %v21_v0 = vstv %s1052_s2  ;;  %v23_v1 = vstv %s1053_s9  ;;  %s18_s19 = int_to_ptr.vmem [resolvable:$true] %s17_s19 }
   0x2   :  { %1057 = sst [smem:[#allocation9_spill]] %s1046_s5  ;;  %22 = vst [vmem:[#allocation5] sm:$0x1] %v21_v0  ;;  %24 = vst [vmem:[#allocation6] sm:$0x1] %v23_v1  ;;  %s699_s24 = scalar_lea.vmem %s18_s19, 16 }
   0x3   :  { %1058 = sst [smem:[#allocation10_spill]] %s1048_s7  ;;  %p700_p0 = scmp.ne.s32.totalorder %s18_s19, %s699_s24 }
   0x4   :  { %1059 = sst [smem:[#allocation11_spill]] %s1049_s8  ;;  %p704_p1 = scmp.lt.s32.totalorder %s18_s19, %s18_s19 }
   0x5   :  { %1060 = sst [smem:[#allocation12_spill]] %s1050_s10  ;;  %p705_p2 = scmp.lt.s32.totalorder %s699_s24, %s699_s24 }
   0x6   :  { %1061 = sst [smem:[#allocation13_spill]] %s1051_s11 }
   0x7   :  { %p706_p3 = por %p705_p2, %p704_p1 }
   0x9   :  { %p707_p4 = pnand %p706_p3, %p700_p0 }
   0xb   :  { %710 = shalt.err (!%p707_p4)  }
   0xc   :  { %s713_s25 = smov [#allocation4]  }
   0xd   :  { %20 = dma.vmem_to_smem %s18_s19, 16, %s713_s25, [#allocation3] }
   0xe   :  { %711 = dma.done.wait [#allocation3], 16 }
   0xf   :  { %712 = vsyncadd [#allocation3], 4294967280 }
  0x10   :  { %26 = sfence }
  0x11   :  { %s615_s0 = sld [smem:[#allocation4 + $0x9]]  ;;  %s619_s26 = sld [smem:[#allocation4 + $0xd]]  ;;  %v692_v14 = vld [vmem:[%s1045_s4] sm:$0xff]   ;;  %vm50_vm0 = vcmask 131072   ;;  %v716_v16 = vmov 0.0   ;;  %v693_v21 = vld [vmem:[%s1045_s4 + $0x8] sm:$0xff]  }
  0x12   :  { %s607_s2 = sld [smem:[#allocation4 + $0x1]]  ;;  %s611_s27 = sld [smem:[#allocation4 + $0x5]]  ;;  %661 = vmatprep.subr.bf16.mxu0 %v716_v16  ;;  %675 = vmatprep.subr.bf16.mxu1 %v716_v16  ;;  %v694_v29 = vld [vmem:[%s1045_s4 + $0x10] sm:$0xff]   ;;  %v695_v32 = vld [vmem:[%s1045_s4 + $0x18] sm:$0xff]   ;;  %vm430_vm1 = vcmask 1041408   ;;  %vm718_vm2 = vmmov 0  }
  0x13   :  { %s627_s9 = sld [smem:[#allocation4 + $0x15]]  ;;  %s623_s28 = sld [smem:[#allocation4 + $0x11]]  ;;  %662 = vmatpush3.bf16.msra.mxu0 %v692_v14  ;;  %v696_v33 = vld [vmem:[%s1045_s4 + $0x20] ss:$0 sps:$4 sm:$0x33]   ;;  %671 = vmatprep.mubr.msk.bf16.mxu0 %vm718_vm2, %v716_v16  ;;  %vm60_vm3 = vcmask 270472  }
  0x14   :  { %s635_s29 = sld [smem:[#allocation4 + $0x1d]]  ;;  %s631_s14 = sld [smem:[#allocation4 + $0x19]]  ;;  %663 = vmatprep.subr.bf16.mxu0 %v716_v16  ;;  %v432_v36 = vsel %vm430_vm1, %v696_v33, 0  ;;  %679 = vmatprep.mubr.msk.bf16.mxu1 %vm718_vm2, %v716_v16  ;;  %vm70_vm4 = vcmask 409872   ;;  %vm80_vm5 = vcmask 549272   ;;  %vm426_vm6 = vcmask 556032  }
  0x15   :  { %s714_s21 = smov 17   ;;  %s612_s25 = sld [smem:[#allocation4 + $0x6]]  ;;  %vm354_vm7 = vcmask 138240   ;;  %vm499_vm8 = vcmask 261120   ;;  %vm379_vm9 = vcmask 7168   ;;  %vm555_vm10 = vcmask 130048  }
  0x16   :  { %s608_s12 = sld [smem:[#allocation4 + $0x2]]  ;;  %s811_s16 = sld [smem:[#allocation4 + $0xe]] }
  0x17   :  { %s124_s13 = scalar_lea.vmem %s1043_s1, %s615_s0  ;;  %s157_s20 = scalar_lea.vmem %s1043_s1, %s619_s26  ;;  %664 = vmatpush3.bf16.msra.mxu0 %v693_v21 }
  0x18   :  { %v125_v2 = vld [vmem:[%s124_s13] sm:$0x1]  ;;  %s54_s17 = scalar_lea.vmem %s1043_s1, %s607_s2  ;;  %s91_s24 = scalar_lea.vmem %s1043_s1, %s611_s27  ;;  %665 = vmatprep.subr.bf16.mxu0 %v716_v16 }
  0x19   :  { %127 = vrot.lane.b32.xlu1 %v125_v2, %s714_s21  ;;  %v55_v3 = vld [vmem:[%s54_s17] sm:$0x1]  ;;  %s223_s2 = scalar_lea.vmem %s1043_s1, %s627_s9  ;;  %s190_s15 = scalar_lea.vmem %s1043_s1, %s623_s28 }
  0x1a   :  { %57 = vrot.lane.b32.xlu0 %v55_v3, %s714_s21  ;;  %v158_v4 = vld [vmem:[%s157_s20] sm:$0x1]  ;;  %s289_s18 = scalar_lea.vmem %s1043_s1, %s635_s29  ;;  %s818_s19 = sld [smem:[#allocation4 + $0xa]] }
  0x1b   :  { %v92_v5 = vld [vmem:[%s91_s24] sm:$0x1]  ;;  %s256_s22 = scalar_lea.vmem %s1043_s1, %s631_s14  ;;  %s824_s28 = sld [smem:[#allocation4 + $0x16]]  ;;  %666 = vmatpush3.bf16.msra.mxu0 %v694_v29 }
  0x1c   :  { %v224_v6 = vld [vmem:[%s223_s2] sm:$0x1]  ;;  %s100_s0 = scalar_lea.vmem %s1043_s1, %s612_s25  ;;  %s830_s29 = sld [smem:[#allocation4 + $0x12]]  ;;  %667 = vmatprep.subr.bf16.mxu0 %v716_v16 }
  0x1d   :  { %160 = vrot.lane.b32.xlu1 %v158_v4, %s714_s21  ;;  %v191_v7 = vld [vmem:[%s190_s15] sm:$0x1]  ;;  %s64_s13 = scalar_lea.vmem %s1043_s1, %s608_s12  ;;  %s166_s15 = scalar_lea.vmem %s1043_s1, %s811_s16 }
  0x1e   :  { %94 = vrot.lane.b32.xlu0 %v92_v5, %s714_s21  ;;  %v290_v8 = vld [vmem:[%s289_s18] sm:$0x1]  ;;  %s840_s27 = sld [smem:[#allocation4 + $0x1e]]  ;;  %s842_s17 = sld [smem:[#allocation4 + $0x1a]]  ;;  %v698_v5 = vld [vmem:[%s1047_s6 + $0x8] sm:$0xff]  }
  0x1f   :  { %v257_v9 = vld [vmem:[%s256_s22] sm:$0x1]  ;;  %s845_s25 = sld [smem:[#allocation4 + $0x7]]  ;;  %s847_s18 = sld [smem:[#allocation4 + $0x3]]  ;;  %668 = vmatpush3.bf16.msra.mxu0 %v695_v32 }
  0x20   :  { %v101_v10 = vld [vmem:[%s100_s0] sm:$0x1]  ;;  %s133_s20 = scalar_lea.vmem %s1043_s1, %s818_s19  ;;  %s853_s16 = sld [smem:[#allocation4 + $0xf]]  ;;  %669 = vmatprep.subr.bf16.mxu0 %v716_v16 }
  0x21   :  { %226 = vrot.lane.b32.xlu1 %v224_v6, %s714_s21  ;;  %v65_v11 = vld [vmem:[%s64_s13] sm:$0x1]  ;;  %s855_s22 = sld [smem:[#allocation4 + $0xb]]  ;;  %s857_s23 = sld [smem:[#allocation4 + $0x17]]  ;;  %v348_v6 = vlaneseq }
  0x22   :  { %193 = vrot.lane.b32.xlu0 %v191_v7, %s714_s21  ;;  %s1054_s24 = smov 34   ;;  %s232_s30 = scalar_lea.vmem %s1043_s1, %s824_s28  ;;  %v167_v12 = vld [vmem:[%s166_s15] sm:$0x1] }
  0x23   :  { %s614_s2 = sld [smem:[#allocation4 + $0x8]]  ;;  %s867_s19 = sld [smem:[#allocation4 + $0xc]]  ;;  %v134_v13 = vld [vmem:[%s133_s20] sm:$0x1]  ;;  %670 = vmatpush3.bf16.msra.mxu0 %v432_v36  ;;  %v349_v7 = vshrl.u32 %v348_v6, 7 }
  0x24   :  { %s865_s13 = sld [smem:[#allocation4]]  ;;  %s199_s12 = scalar_lea.vmem %s1043_s1, %s830_s29  ;;  %v233_v15 = vld [vmem:[%s232_s30] sm:$0x1] }
  0x25   :  { %292 = vrot.lane.b32.xlu1 %v290_v8, %s714_s21  ;;  %s873_s9 = sld [smem:[#allocation4 + $0x4]]  ;;  %s877_s28 = sld [smem:[#allocation4 + $0x10]]  ;;  %v200_v17 = vld [vmem:[%s199_s12] sm:$0x1] }
  0x26   :  { %259 = vrot.lane.b32.xlu0 %v257_v9, %s714_s21  ;;  %s875_s11 = sld [smem:[#allocation4 + $0x14]]  ;;  %s880_s21 = sld [smem:[#allocation4 + $0x13]]  ;;  %v697_v4 = vld [vmem:[%s1047_s6] sm:$0xff]  }
  0x27   :  { %s882_s15 = sld [smem:[#allocation4 + $0x1c]]  ;;  %s298_s26 = scalar_lea.vmem %s1043_s1, %s840_s27  ;;  %676 = vmatpush3.bf16.msra.mxu1 %v697_v4 }
  0x28   :  { %s892_s8 = sld [smem:[#allocation4 + $0x18]]  ;;  %s265_s0 = scalar_lea.vmem %s1043_s1, %s842_s17  ;;  %v299_v22 = vld [vmem:[%s298_s26] sm:$0x1]  ;;  %677 = vmatprep.subr.bf16.mxu1 %v716_v16 }
  0x29   :  { %103 = vrot.lane.b32.xlu1 %v101_v10, %s1054_s24  ;;  %s119_s30 = scalar_lea.vmem %s1043_s1, %s614_s2  ;;  %s152_s3 = scalar_lea.vmem %s1043_s1, %s867_s19  ;;  %v266_v24 = vld [vmem:[%s265_s0] sm:$0x1] }
  0x2a   :  { %67 = vrot.lane.b32.xlu0 %v65_v11, %s1054_s24  ;;  %v120_v18 = vld [vmem:[%s119_s30] sm:$0x1]  ;;  %s48_s14 = scalar_lea.vmem %s1043_s1, %s865_s13  ;;  %s1062_s7 = smov 34   ;;  %v350_v11 = vsub.s32 0, %v349_v7 }
  0x2b   :  { %121 = vst.msk [vmem:[#allocation2 + $0x2] sm:$0x1] %vm50_vm0, %v120_v18  ;;  %v49_v19 = vld [vmem:[%s48_s14] sm:$0x1]  ;;  %s86_s17 = scalar_lea.vmem %s1043_s1, %s873_s9  ;;  %s185_s30 = scalar_lea.vmem %s1043_s1, %s877_s28  ;;  %678 = vmatpush3.bf16.msra.mxu1 %v698_v5 }
  0x2c   :  { %v153_v20 = vld [vmem:[%s152_s3] sm:$0x1]  ;;  %51 = vst.msk [vmem:[#allocation2] sm:$0x1] %vm50_vm0, %v49_v19  ;;  %s218_s19 = scalar_lea.vmem %s1043_s1, %s875_s11  ;;  %s109_s14 = scalar_lea.vmem %s1043_s1, %s845_s25 }
  0x2d   :  { %169 = vrot.lane.b32.xlu1 %v167_v12, %s1054_s24  ;;  %154 = vst.msk [vmem:[#allocation2 + $0x3] sm:$0x1] %vm50_vm0, %v153_v20  ;;  %v87_v23 = vld [vmem:[%s86_s17] sm:$0x1]  ;;  %s284_s5 = scalar_lea.vmem %s1043_s1, %s882_s15  ;;  %s74_s17 = scalar_lea.vmem %s1043_s1, %s847_s18 }
  0x2e   :  { %136 = vrot.lane.b32.xlu0 %v134_v13, %s1054_s24  ;;  %88 = vst.msk [vmem:[#allocation2 + $0x1] sm:$0x1] %vm50_vm0, %v87_v23  ;;  %v219_v25 = vld [vmem:[%s218_s19] sm:$0x1]  ;;  %s251_s0 = scalar_lea.vmem %s1043_s1, %s892_s8  ;;  %s175_s13 = scalar_lea.vmem %s1043_s1, %s853_s16 }
  0x2f   :  { %v186_v26 = vld [vmem:[%s185_s30] sm:$0x1]  ;;  %220 = vst.msk [vmem:[#allocation2 + $0x5] sm:$0x1] %vm50_vm0, %v219_v25  ;;  %s637_s24 = sld [smem:[#allocation4 + $0x1f]]  ;;  %s142_s20 = scalar_lea.vmem %s1043_s1, %s855_s22 }
  0x30   :  { %187 = vst.msk [vmem:[#allocation2 + $0x4] sm:$0x1] %vm50_vm0, %v186_v26  ;;  %v285_v27 = vld [vmem:[%s284_s5] sm:$0x1]  ;;  %s633_s9 = sld [smem:[#allocation4 + $0x1b]]  ;;  %s241_s22 = scalar_lea.vmem %s1043_s1, %s857_s23 }
  0x31   :  { %235 = vrot.lane.b32.xlu1 %v233_v15, %s1062_s7  ;;  %286 = vst.msk [vmem:[#allocation2 + $0x7] sm:$0x1] %vm50_vm0, %v285_v27  ;;  %v252_v28 = vld [vmem:[%s251_s0] sm:$0x1]  ;;  %s208_s11 = scalar_lea.vmem %s1043_s1, %s880_s21  ;;  %s720_s21 = smov 94  }
  0x32   :  { %202 = vrot.lane.b32.xlu0 %v200_v17, %s1062_s7  ;;  %v110_v30 = vld [vmem:[%s109_s14] sm:$0x1]  ;;  %253 = vst.msk [vmem:[#allocation2 + $0x6] sm:$0x1] %vm50_vm0, %v252_v28  ;;  %s721_s0 = smov 77   ;;  %s1063_s3 = sld [smem:[#allocation8_spill]] }
  0x33   :  { %v75_v31 = vld [vmem:[%s74_s17] sm:$0x1]  ;;  %s1065_s30 = sld [smem:[#allocation12_spill]]  ;;  %s1066_s14 = sld [smem:[#allocation10_spill]] }
  0x34   :  { %v176_v34 = vld [vmem:[%s175_s13] sm:$0x1] }
  0x35   :  { %301 = vrot.lane.b32.xlu1 %v299_v22, %s1062_s7  ;;  %v143_v35 = vld [vmem:[%s142_s20] sm:$0x1]  ;;  %s307_s17 = scalar_lea.vmem %s1043_s1, %s637_s24  ;;  %s1064_s20 = sld [smem:[#allocation9_spill]] }
  0x36   :  { %268 = vrot.lane.b32.xlu0 %v266_v24, %s1062_s7  ;;  %s717_s7 = smov 51   ;;  %v242_v37 = vld [vmem:[%s241_s22] sm:$0x1]  ;;  %s274_s23 = scalar_lea.vmem %s1043_s1, %s633_s9 }
  0x37   :  { %v209_v38 = vld [vmem:[%s208_s11] sm:$0x1]  ;;  %s719_s1 = smov 111   ;;  %s1067_s22 = sld [smem:[#allocation11_spill]] }
  0x38   :  { %v308_v39 = vld [vmem:[%s307_s17] sm:$0x1]  ;;  %s1068_s11 = sld [smem:[#allocation13_spill]] }
  0x39   :  { %112 = vrot.lane.b32.xlu1 %v110_v30, %s717_s7  ;;  %v275_v40 = vld [vmem:[%s274_s23] sm:$0x1] }
  0x3a   :  { %77 = vrot.lane.b32.xlu0 %v75_v31, %s717_s7  ;;  %v344_v9 = vld [vmem:[%s1063_s3] sm:$0x1] }
  0x3b   :  { %v359_v12 = vsub.f32 1.0, %v344_v9  ;;  %v351_v26 = vrot.slane %v344_v9, %v350_v11  ;;  %v639_v31 = vld [vmem:[%s1064_s20] ss:$0 sm:$0xff] }
  0x3d   :  { %178 = vrot.lane.b32.xlu1 %v176_v34, %s717_s7  ;;  %v364_v18 = vrot.slane %v359_v12, %v350_v11 }
  0x3e   :  { %145 = vrot.lane.b32.xlu0 %v143_v35, %s717_s7 }
  0x41   :  { %244 = vrot.lane.b32.xlu1 %v242_v37, %s717_s7 }
  0x42   :  { %211 = vrot.lane.b32.xlu0 %v209_v38, %s717_s7 }
  0x45   :  { %310 = vrot.lane.b32.xlu1 %v308_v39, %s717_s7  ;;  %v638_v39 = vld [vmem:[#allocation5] ss:$0 sm:$0xff] }
  0x46   :  { %277 = vrot.lane.b32.xlu0 %v275_v40, %s717_s7 }
  0x8b   :  { %v128_v41 = vpop.permute.xlu1 %127 }
  0x8c   :  { %130 = vst.msk [vmem:[#allocation2 + $0x2] sm:$0x1] %vm60_vm3, %v128_v41  ;;  %v58_v42 = vpop.permute.xlu0 %57 }
  0x8d   :  { %61 = vst.msk [vmem:[#allocation2] sm:$0x1] %vm60_vm3, %v58_v42 }
  0x8f   :  { %v161_v43 = vpop.permute.xlu1 %160 }
  0x90   :  { %163 = vst.msk [vmem:[#allocation2 + $0x3] sm:$0x1] %vm60_vm3, %v161_v43  ;;  %v95_v44 = vpop.permute.xlu0 %94 }
  0x91   :  { %97 = vst.msk [vmem:[#allocation2 + $0x1] sm:$0x1] %vm60_vm3, %v95_v44 }
  0x93   :  { %v227_v45 = vpop.permute.xlu1 %226 }
  0x94   :  { %229 = vst.msk [vmem:[#allocation2 + $0x5] sm:$0x1] %vm60_vm3, %v227_v45  ;;  %v194_v46 = vpop.permute.xlu0 %193  ;;  %v646_v45 = vld [vmem:[%s1066_s14] ss:$0 sm:$0xff] }
  0x95   :  { %196 = vst.msk [vmem:[#allocation2 + $0x4] sm:$0x1] %vm60_vm3, %v194_v46 }
  0x97   :  { %v293_v47 = vpop.permute.xlu1 %292 }
  0x98   :  { %295 = vst.msk [vmem:[#allocation2 + $0x7] sm:$0x1] %vm60_vm3, %v293_v47  ;;  %v260_v48 = vpop.permute.xlu0 %259 }
  0x99   :  { %262 = vst.msk [vmem:[#allocation2 + $0x6] sm:$0x1] %vm60_vm3, %v260_v48 }
  0x9b   :  { %v104_v49 = vpop.permute.xlu1 %103 }
  0x9c   :  { %106 = vst.msk [vmem:[#allocation2 + $0x1] sm:$0x1] %vm70_vm4, %v104_v49  ;;  %v68_v50 = vpop.permute.xlu0 %67 }
  0x9d   :  { %71 = vst.msk [vmem:[#allocation2] sm:$0x1] %vm70_vm4, %v68_v50 }
  0x9f   :  { %v170_v51 = vpop.permute.xlu1 %169 }
  0xa0   :  { %172 = vst.msk [vmem:[#allocation2 + $0x3] sm:$0x1] %vm70_vm4, %v170_v51  ;;  %v137_v52 = vpop.permute.xlu0 %136 }
  0xa1   :  { %139 = vst.msk [vmem:[#allocation2 + $0x2] sm:$0x1] %vm70_vm4, %v137_v52 }
  0xa3   :  { %v236_v53 = vpop.permute.xlu1 %235 }
  0xa4   :  { %238 = vst.msk [vmem:[#allocation2 + $0x5] sm:$0x1] %vm70_vm4, %v236_v53  ;;  %v203_v54 = vpop.permute.xlu0 %202  ;;  %v650_v53 = vld [vmem:[%s1067_s22] ss:$0 sm:$0xff] }
  0xa5   :  { %205 = vst.msk [vmem:[#allocation2 + $0x4] sm:$0x1] %vm70_vm4, %v203_v54 }
  0xa7   :  { %v302_v55 = vpop.permute.xlu1 %301 }
  0xa8   :  { %304 = vst.msk [vmem:[#allocation2 + $0x7] sm:$0x1] %vm70_vm4, %v302_v55  ;;  %v269_v56 = vpop.permute.xlu0 %268 }
  0xa9   :  { %271 = vst.msk [vmem:[#allocation2 + $0x6] sm:$0x1] %vm70_vm4, %v269_v56 }
  0xab   :  { %v113_v57 = vpop.permute.xlu1 %112 }
  0xac   :  { %115 = vst.msk [vmem:[#allocation2 + $0x1] sm:$0x1] %vm80_vm5, %v113_v57  ;;  %v78_v58 = vpop.permute.xlu0 %77  ;;  %v651_v57 = vld [vmem:[#allocation6] ss:$0 sm:$0xff] }
  0xad   :  { %81 = vst.msk [vmem:[#allocation2] sm:$0x1] %vm80_vm5, %v78_v58 }
  0xaf   :  { %v179_v59 = vpop.permute.xlu1 %178 }
  0xb0   :  { %181 = vst.msk [vmem:[#allocation2 + $0x3] sm:$0x1] %vm80_vm5, %v179_v59  ;;  %v146_v60 = vpop.permute.xlu0 %145 }
  0xb1   :  { %148 = vst.msk [vmem:[#allocation2 + $0x2] sm:$0x1] %vm80_vm5, %v146_v60 }
  0xb3   :  { %v245_v61 = vpop.permute.xlu1 %244 }
  0xb4   :  { %247 = vst.msk [vmem:[#allocation2 + $0x5] sm:$0x1] %vm80_vm5, %v245_v61  ;;  %v212_v62 = vpop.permute.xlu0 %211 }
  0xb5   :  { %214 = vst.msk [vmem:[#allocation2 + $0x4] sm:$0x1] %vm80_vm5, %v212_v62 }
  0xb7   :  { %v311_v63 = vpop.permute.xlu1 %310 }
  0xb8   :  { %313 = vst.msk [vmem:[#allocation2 + $0x7] sm:$0x1] %vm80_vm5, %v311_v63  ;;  %v278_v0 = vpop.permute.xlu0 %277 }
  0xb9   :  { %280 = vst.msk [vmem:[#allocation2 + $0x6] sm:$0x1] %vm80_vm5, %v278_v0 }
  0xc0   :  { %v314_v1 = vld [vmem:[#allocation2] sm:$0xff] }
  0xc1   :  { %319 = vrot.lane.b32.xlu0 %v314_v1, %s719_s1  ;;  %v382_v2 = vpack.c.bf16 %v314_v1, %v314_v1  ;;  %v316_v3 = vmul.f32 %v314_v1, %v314_v1 }
  0xc3   :  { %672 = vmatmul.mubr.msk.bf16.vlgmr.msra.gmra.mrb[0].mxu0 %vm426_vm6, %v382_v2  ;;  %324 = vrot.lane.b32.xlu1 %v316_v3, %s719_s1 }
  0xc5   :  { %328 = vrot.lane.b32.xlu0 %v314_v1, %s720_s21 }
  0xc7   :  { %332 = vrot.lane.b32.xlu1 %v316_v3, %s720_s21 }
  0xc9   :  { %336 = vrot.lane.b32.xlu0 %v314_v1, %s721_s0 }
  0xcb   :  { %340 = vrot.lane.b32.xlu1 %v316_v3, %s721_s0 }
 0x133   :  { %v320_v8 = vpop.permute.xlu0 %319 }
 0x134   :  { %v322_v14 = vadd.f32 %v320_v8, %v314_v1 }
 0x135   :  { %v325_v10 = vpop.permute.xlu1 %324 }
 0x136   :  { %v327_v17 = vadd.f32 %v325_v10, %v316_v3 }
 0x137   :  { %v329_v13 = vpop.permute.xlu0 %328 }
 0x138   :  { %v331_v16 = vadd.f32 %v329_v13, %v322_v14 }
 0x139   :  { %v333_v15 = vpop.permute.xlu1 %332 }
 0x13a   :  { %v335_v20 = vadd.f32 %v333_v15, %v327_v17 }
 0x13b   :  { %v337_v19 = vpop.permute.xlu0 %336 }
 0x13c   :  { %v339_v21 = vadd.f32 %v337_v19, %v331_v16 }
 0x13d   :  { %v341_v22 = vpop.permute.xlu1 %340 }
 0x13e   :  { %v345_v23 = vmul.f32 %v339_v21, %v339_v21  ;;  %v343_v24 = vadd.f32 %v341_v22, %v335_v20  ;;  %v366_v25 = vmul.f32 %v364_v18, %v339_v21 }
 0x140   :  { %v346_v27 = vsub.f32 %v345_v23, %v343_v24  ;;  %v367_v28 = vsel %vm354_vm7, %v366_v25, 0.0 }
 0x141   :  { %368 = vadd.xlane.f32.xlu1 %v367_v28 }
 0x142   :  { %v353_v29 = vmul.f32 %v351_v26, %v346_v27 }
 0x144   :  { %v355_v30 = vsel %vm354_vm7, %v353_v29, 0.0 }
 0x145   :  { %356 = vadd.xlane.f32.xlu0 %v355_v30 }
 0x196   :  { %v468_v32 = vpop.f32.mrb[0].mxu0 }
 0x197   :  { %v469_v33 = vadd.f32 %v639_v31, %v468_v32  ;;  %v673_v34 = vpop.f32.mrb[1].mxu0 }
 0x198   :  { %v471_v35 = vpop.f32.mrb[2].mxu0 }
 0x199   :  { %v474_v36 = vmax.f32 %v469_v33, 0.0  ;;  %v674_v37 = vpop.f32.mrb[3].mxu0 }
 0x19b   :  { %v475_v38 = vpack.c.bf16 %v474_v36, %v474_v36 }
 0x19d   :  { %680 = vmatmul.mubr.msk.bf16.vlgmr.msra.gmra.mrb[0].mxu1 %vm499_vm8, %v475_v38 }
 0x1ce   :  { %v369_v40 = vpop.xlane.xlu1 %368 }
 0x1cf   :  { %v377_v42 = vadd.f32 %v638_v39, %v369_v40 }
 0x1d2   :  { %v357_v41 = vpop.xlane.xlu0 %356 }
 0x1d3   :  { %v358_v43 = vmul.f32 0.5, %v357_v41 }
 0x1d5   :  { %v378_v44 = vadd.f32 %v377_v42, %v358_v43 }
 0x1d7   :  { %380 = vst.msk [vmem:[%s1065_s30] sm:$0xff] %vm379_vm9, %v378_v44 }
 0x270   :  { %v537_v46 = vpop.f32.mrb[0].mxu1 }
 0x271   :  { %v538_v47 = vadd.f32 %v646_v45, %v537_v46  ;;  %v681_v48 = vpop.f32.mrb[1].mxu1 }
 0x272   :  { %v540_v49 = vpop.f32.mrb[2].mxu1 }
 0x273   :  { %v543_v50 = vmax.f32 %v538_v47, 0.0  ;;  %v682_v51 = vpop.f32.mrb[3].mxu1 }
 0x275   :  { %v544_v52 = vpack.c.bf16 %v543_v50, %v543_v50 }
 0x277   :  { %v547_v54 = vunpack.c.l.bf16 %v544_v52 }
 0x279   :  { %v554_v55 = vmul.f32 %v650_v53, %v547_v54 }
 0x27b   :  { %v556_v56 = vsel %vm555_vm10, %v554_v55, 0.0 }
 0x27c   :  { %557 = vadd.xlane.f32.xlu0 %v556_v56 }
 0x309   :  { %v558_v58 = vpop.xlane.xlu0 %557 }
 0x30a   :  { %v565_v59 = vadd.f32 %v651_v57, %v558_v58 }
 0x30c   :  { %566 = vst.msk [vmem:[%s1068_s11] sm:$0xff] %vm379_vm9, %v565_v59 }

</bundles_post_ra>
